<compile_context>
chip_gen: v7x
topology: tpu7x:2x2x1
jax: 0.10.0
libtpu: 0.0.40
codegen_flags: <defaults>
</compile_context>

<pallas_src>
import jax
import jax.numpy as jnp
from jax.experimental import pallas as pl
from jax.experimental.pallas import tpu as pltpu


def _round_up(x, m):
    return (x + m - 1) // m * m


# ---------------------------------------------------------------------------
# Kernels
# ---------------------------------------------------------------------------
def _mlp_kernel_acc_in_out(x_ref, w_fc_ref, w_fc2_ref, w_proj_ref, o_ref):
    """f32-output variant: accumulate the c_proj reduction directly in o_ref
    (which is resident across the h axis), no extra scratch."""
    h = pl.program_id(1)

    @pl.when(h == 0)
    def _():
        o_ref[...] = jnp.zeros_like(o_ref)

    x = x_ref[...]
    h_fc = jnp.dot(x, w_fc_ref[...], preferred_element_type=jnp.float32)
    h_fc2 = jnp.dot(x, w_fc2_ref[...], preferred_element_type=jnp.float32)
    # SiLU(h_fc2) * h_fc : sigmoid on EUP, multiplies on VPU, all in f32.
    gated = (h_fc2 * jax.nn.sigmoid(h_fc2)) * h_fc
    o_ref[...] += jnp.dot(gated.astype(w_proj_ref.dtype), w_proj_ref[...],
                          preferred_element_type=jnp.float32)


def _mlp_kernel_scratch_acc(x_ref, w_fc_ref, w_fc2_ref, w_proj_ref, o_ref,
                            acc_ref):
    """Narrow-output (bf16) variant: f32 VMEM accumulator, cast once at end."""
    h = pl.program_id(1)

    @pl.when(h == 0)
    def _():
        acc_ref[...] = jnp.zeros_like(acc_ref)

    x = x_ref[...]
    h_fc = jnp.dot(x, w_fc_ref[...], preferred_element_type=jnp.float32)
    h_fc2 = jnp.dot(x, w_fc2_ref[...], preferred_element_type=jnp.float32)
    gated = (h_fc2 * jax.nn.sigmoid(h_fc2)) * h_fc
    acc_ref[...] += jnp.dot(gated.astype(w_proj_ref.dtype), w_proj_ref[...],
                            preferred_element_type=jnp.float32)

    @pl.when(h == pl.num_programs(1) - 1)
    def _():
        o_ref[...] = acc_ref[...].astype(o_ref.dtype)


# ---------------------------------------------------------------------------
# Wrapper
# ---------------------------------------------------------------------------
def _tpu_vmem_capacity_bytes():
    try:
        return int(pltpu.get_tpu_info().vmem_capacity_bytes)
    except Exception:
        return 128 << 20  # conservative v5e/v6e default


def _vmem_estimate(tm, th, D, in_b, w_b, out_b, use_scratch):
    est = 2 * tm * D * in_b            # x tiles (double-buffered across i)
    est += 2 * tm * D * out_b          # output tiles (double-buffered)
    est += 2 * 2 * D * th * w_b        # w_fc + w_fc2 tiles (double-buffered)
    est += 2 * th * D * w_b            # w_proj tiles (double-buffered)
    if use_scratch:
        est += tm * D * 4              # f32 accumulator scratch
    est += 2 * tm * th * 4             # h_fc / h_fc2 intermediates (f32)
    est += tm * th * max(4, w_b)       # gated intermediate
    est += tm * D * 4                  # c_proj partial product (f32)
    return est


def mlp_pallas(x, w_fc, w_fc2, w_proj, *, tm=None, th=None, compute_dtype=None):
    """SwiGLU MLP forward: c_proj(silu(c_fc2(x)) * c_fc(x)).

    x:      (B, T, D)
    w_fc:   (D, H)  c_fc  weight, stored transposed (in, out)
    w_fc2:  (D, H)  c_fc2 weight, stored transposed (in, out)
    w_proj: (H, D)  c_proj weight, stored transposed (in, out)
    """
    B, T, D = x.shape
    H = w_fc.shape[1]
    assert w_fc.shape == (D, H) and w_fc2.shape == (D, H) and w_proj.shape == (H, D)

    M = B * T
    out_dtype = x.dtype
    if compute_dtype is None:
        # Keep MXU operands bf16 even for f32 inputs (f32 accumulation inside).
        compute_dtype = jnp.bfloat16 if out_dtype == jnp.float32 else out_dtype

    # ---- generation-aware VMEM budget & preferred tiles -------------------
    vmem_cap = _tpu_vmem_capacity_bytes()
    vmem_budget = max(vmem_cap - (12 << 20), 24 << 20)   # leave headroom
    if vmem_cap <= (96 << 20):        # v7x class: 64 MiB per TensorCore
        tm_pref, th_pref = 512, 256
    else:                             # v5e / v6e: 128 MiB
        tm_pref, th_pref = 1024, 512
    if tm is None:
        tm = tm_pref
    if th is None:
        th = th_pref

    # ---- hidden tile: lane-aligned, pad H if needed ------------------------
    th = min(th, _round_up(H, 128))
    H_pad = _round_up(H, th)

    # ---- token tile: clamp to problem size, keep >= 2 token tiles ---------
    tm = min(tm, _round_up(M, 8))
    M_pad = _round_up(M, tm)
    if M_pad // tm == 1 and M_pad > 8:
        # Split so the "parallel" axis can shard across v7x's two TensorCores
        # (a no-op on single-TC v5e/v6e).
        tm = _round_up((M_pad + 1) // 2, 8)
        M_pad = _round_up(M, tm)

    in_b = jnp.dtype(compute_dtype).itemsize
    w_b = in_b
    out_b = jnp.dtype(out_dtype).itemsize
    use_scratch = out_dtype != jnp.float32

    # Shrink tiles until the double-buffered footprint fits the VMEM budget.
    while (_vmem_estimate(tm, th, D, in_b, w_b, out_b, use_scratch) > vmem_budget
           and tm > 128):
        tm = _round_up(tm // 2, 8)
        M_pad = _round_up(M, tm)
    while (_vmem_estimate(tm, th, D, in_b, w_b, out_b, use_scratch) > vmem_budget
           and th > 128 and th % 256 == 0):
        th //= 2  # H_pad stays a multiple of th

    # ---- operand prep (no per-call repack; only optional zero-pad) --------
    x2d = x.reshape(M, D)
    if M_pad != M:
        x2d = jnp.pad(x2d, ((0, M_pad - M), (0, 0)))
    if H_pad != H:
        # TODO(synk): in a real model, pad the weights once at load time.
        w_fc = jnp.pad(w_fc, ((0, 0), (0, H_pad - H)))
        w_fc2 = jnp.pad(w_fc2, ((0, 0), (0, H_pad - H)))
        w_proj = jnp.pad(w_proj, ((0, H_pad - H), (0, 0)))

    x2d = x2d.astype(compute_dtype)
    w_fc_c = w_fc.astype(compute_dtype)
    w_fc2_c = w_fc2.astype(compute_dtype)
    w_proj_c = w_proj.astype(compute_dtype)

    grid = (M_pad // tm, H_pad // th)
    n_tok_tiles = grid[0]

    vmem_est = _vmem_estimate(tm, th, D, in_b, w_b, out_b, use_scratch)
    vmem_limit = min(max(int(vmem_est * 1.25) + (4 << 20), 32 << 20), vmem_budget)

    weight_bytes = (2 * D * H_pad + H_pad * D) * w_b
    cost = pl.CostEstimate(
        flops=6 * M_pad * D * H_pad,
        transcendentals=M_pad * H_pad,
        bytes_accessed=M_pad * D * (in_b + out_b) + n_tok_tiles * weight_bytes,
    )

    kernel = _mlp_kernel_scratch_acc if use_scratch else _mlp_kernel_acc_in_out
    scratch_shapes = ([pltpu.VMEM((tm, D), jnp.float32)] if use_scratch else [])

    out2d = pl.pallas_call(
        kernel,
        out_shape=jax.ShapeDtypeStruct((M_pad, D), out_dtype),
        grid_spec=pltpu.PrefetchScalarGridSpec(
            num_scalar_prefetch=0,
            grid=grid,
            in_specs=[
                pl.BlockSpec((tm, D), lambda i, h: (i, 0)),    # x tile (resident over h)
                pl.BlockSpec((D, th), lambda i, h: (0, h)),    # c_fc  weight tile
                pl.BlockSpec((D, th), lambda i, h: (0, h)),    # c_fc2 weight tile
                pl.BlockSpec((th, D), lambda i, h: (h, 0)),    # c_proj weight tile
            ],
            out_specs=pl.BlockSpec((tm, D), lambda i, h: (i, 0)),
            scratch_shapes=scratch_shapes,
        ),
        compiler_params=pltpu.CompilerParams(
            dimension_semantics=("parallel", "arbitrary"),
            vmem_limit_bytes=vmem_limit,
        ),
        cost_estimate=cost,
    )(x2d, w_fc_c, w_fc2_c, w_proj_c)

    if M_pad != M:
        out2d = out2d[:M]
    return out2d.reshape(B, T, D)


def mlp_reference(x, w_fc, w_fc2, w_proj):
    xf = x.astype(jnp.float32)
    h_fc = jnp.einsum("btd,dh->bth", xf, w_fc.astype(jnp.float32))
    h_fc2 = jnp.einsum("btd,dh->bth", xf, w_fc2.astype(jnp.float32))
    gated = jax.nn.silu(h_fc2) * h_fc
    return jnp.einsum("bth,hd->btd", gated, w_proj.astype(jnp.float32))


if __name__ == "__main__":
    # Small config consistent with the module: n_embd=128, hidden_dim=256.
    B, T, D, H = 2, 64, 128, 256

    key = jax.random.PRNGKey(0)
    kx, k1, k2, k3 = jax.random.split(key, 4)

    x = jax.random.normal(kx, (B, T, D), dtype=jnp.float32)

    # Deterministic PyTorch-Linear-like init, stored as (in, out).
    def init_w(k, fan_in, fan_out):
        bound = 1.0 / (fan_in ** 0.5)
        return jax.random.uniform(k, (fan_in, fan_out), jnp.float32,
                                  minval=-bound, maxval=bound)

    w_fc = init_w(k1, D, H)     # c_fc  : n_embd -> hidden
    w_fc2 = init_w(k2, D, H)    # c_fc2 : n_embd -> hidden
    w_proj = init_w(k3, H, D)   # c_proj: hidden -> n_embd

    ref = mlp_reference(x, w_fc, w_fc2, w_proj)

    # 1) Full-f32 compute path (exact structural check, tight tolerance).
    out_f32 = jax.block_until_ready(
        mlp_pallas(x, w_fc, w_fc2, w_proj, compute_dtype=jnp.float32))
    assert out_f32.shape == (B, T, D) and out_f32.dtype == jnp.float32
    assert jnp.allclose(out_f32, ref, atol=2e-3, rtol=2e-3), "f32 compute mismatch"

    # 2) Default path: f32 in/out, bf16 MXU operands with f32 accumulation.
    out = jax.block_until_ready(mlp_pallas(x, w_fc, w_fc2, w_proj))
    assert out.shape == (B, T, D) and out.dtype == jnp.float32
    assert jnp.allclose(out, ref, atol=5e-2, rtol=5e-2), "auto-bf16 mismatch"

    # 3) bf16 operands end-to-end (uses the f32-scratch accumulator kernel).
    xb, wfb, wf2b, wpb = (a.astype(jnp.bfloat16) for a in (x, w_fc, w_fc2, w_proj))
    out_bf = jax.block_until_ready(mlp_pallas(xb, wfb, wf2b, wpb))
    ref_bf = mlp_reference(xb, wfb, wf2b, wpb)
    assert out_bf.shape == (B, T, D) and out_bf.dtype == jnp.bfloat16
    assert jnp.allclose(out_bf.astype(jnp.float32), ref_bf,
                        atol=5e-2, rtol=5e-2), "bf16 mismatch"

    print("KERNEL_OK")
</pallas_src>

<mosaic_0001>
module attributes {stable_mosaic.version = 11 : i64} {
  func.func @_mlp_kernel_acc_in_out(%arg0: i32, %arg1: i32, %arg2: memref<64x128xf32, #tpu.memory_space<vmem>>, %arg3: memref<128x256xf32, #tpu.memory_space<vmem>>, %arg4: memref<128x256xf32, #tpu.memory_space<vmem>>, %arg5: memref<256x128xf32, #tpu.memory_space<vmem>>, %arg6: memref<64x128xf32, #tpu.memory_space<vmem>>) attributes {dimension_semantics = [#tpu.dimension_semantics<parallel>, #tpu.dimension_semantics<arbitrary>], iteration_bounds = array<i64: 2, 1>, scalar_prefetch = 0 : i64, scratch_operands = 0 : i64, tpu.core_type = #tpu.core_type<tc>, window_params = [{transform_indices = @transform_0, window_bounds = array<i64: 64, 128>}, {transform_indices = @transform_1, window_bounds = array<i64: 128, 256>}, {transform_indices = @transform_2, window_bounds = array<i64: 128, 256>}, {transform_indices = @transform_3, window_bounds = array<i64: 256, 128>}, {transform_indices = @transform_4, window_bounds = array<i64: 64, 128>}]} {
    %c0_i32 = arith.constant 0 : i32
    %0 = arith.cmpi eq, %arg1, %c0_i32 : i32
    %1 = arith.extui %0 : i1 to i32
    %c0_i32_0 = arith.constant 0 : i32
    %2 = arith.cmpi ne, %1, %c0_i32_0 : i32
    scf.if %2 {
      %cst_15 = arith.constant 0.000000e+00 : f32
      %20 = vector.broadcast %cst_15 : f32 to vector<64x128xf32>
      %c0_16 = arith.constant 0 : index
      %c0_17 = arith.constant 0 : index
      %21 = vector.load %arg6[%c0_16, %c0_17] : memref<64x128xf32, #tpu.memory_space<vmem>>, vector<64x128xf32>
      tpu.vector_store %arg6[%c0_16, %c0_17], %20 {strides = array<i32>} : memref<64x128xf32, #tpu.memory_space<vmem>>, vector<64x128xf32>,
    } else {
    }
    %c0 = arith.constant 0 : index
    %c0_1 = arith.constant 0 : index
    %3 = vector.load %arg2[%c0, %c0_1] : memref<64x128xf32, #tpu.memory_space<vmem>>, vector<64x128xf32>
    %c0_2 = arith.constant 0 : index
    %c0_3 = arith.constant 0 : index
    %4 = vector.load %arg3[%c0_2, %c0_3] : memref<128x256xf32, #tpu.memory_space<vmem>>, vector<128x256xf32>
    %cst = arith.constant dense<0.000000e+00> : vector<64x256xf32>
    %5 = tpu.matmul %3, %4, %cst {dimension_numbers = #tpu.dot_dimension_numbers<[1], [0], [0], [1], [0, 0, 1, 1], [], []>} : vector<64x128xf32>, vector<128x256xf32>, vector<64x256xf32> -> vector<64x256xf32>
    %c0_4 = arith.constant 0 : index
    %c0_5 = arith.constant 0 : index
    %6 = vector.load %arg4[%c0_4, %c0_5] : memref<128x256xf32, #tpu.memory_space<vmem>>, vector<128x256xf32>
    %cst_6 = arith.constant dense<0.000000e+00> : vector<64x256xf32>
    %7 = tpu.matmul %3, %6, %cst_6 {dimension_numbers = #tpu.dot_dimension_numbers<[1], [0], [0], [1], [0, 0, 1, 1], [], []>} : vector<64x128xf32>, vector<128x256xf32>, vector<64x256xf32> -> vector<64x256xf32>
    %8 = arith.negf %7 : vector<64x256xf32>
    %9 = math.exp %8 : vector<64x256xf32>
    %cst_7 = arith.constant 1.000000e+00 : f32
    %10 = vector.broadcast %cst_7 : f32 to vector<64x256xf32>
    %11 = arith.addf %10, %9 : vector<64x256xf32>
    %12 = arith.divf %10, %11 : vector<64x256xf32>
    %13 = arith.mulf %7, %12 : vector<64x256xf32>
    %14 = arith.mulf %13, %5 : vector<64x256xf32>
    %c0_8 = arith.constant 0 : index
    %c0_9 = arith.constant 0 : index
    %15 = vector.load %arg6[%c0_8, %c0_9] : memref<64x128xf32, #tpu.memory_space<vmem>>, vector<64x128xf32>
    %c0_10 = arith.constant 0 : index
    %c0_11 = arith.constant 0 : index
    %16 = vector.load %arg5[%c0_10, %c0_11] : memref<256x128xf32, #tpu.memory_space<vmem>>, vector<256x128xf32>
    %cst_12 = arith.constant dense<0.000000e+00> : vector<64x128xf32>
    %17 = tpu.matmul %14, %16, %cst_12 {dimension_numbers = #tpu.dot_dimension_numbers<[1], [0], [0], [1], [0, 0, 1, 1], [], []>} : vector<64x256xf32>, vector<256x128xf32>, vector<64x128xf32> -> vector<64x128xf32>
    %18 = arith.addf %15, %17 : vector<64x128xf32>
    %c0_13 = arith.constant 0 : index
    %c0_14 = arith.constant 0 : index
    %19 = vector.load %arg6[%c0_13, %c0_14] : memref<64x128xf32, #tpu.memory_space<vmem>>, vector<64x128xf32>
    tpu.vector_store %arg6[%c0_13, %c0_14], %18 {strides = array<i32>} : memref<64x128xf32, #tpu.memory_space<vmem>>, vector<64x128xf32>,
    return
  }
  func.func @transform_0(%arg0: i32, %arg1: i32) -> (i32, i32) {
    %c0_i32 = arith.constant 0 : i32
    %c0_i32_0 = arith.constant 0 : i32
    return %arg0, %c0_i32 : i32, i32
  }
  func.func @transform_1(%arg0: i32, %arg1: i32) -> (i32, i32) {
    %c0_i32 = arith.constant 0 : i32
    %c0_i32_0 = arith.constant 0 : i32
    return %c0_i32, %arg1 : i32, i32
  }
  func.func @transform_2(%arg0: i32, %arg1: i32) -> (i32, i32) {
    %c0_i32 = arith.constant 0 : i32
    %c0_i32_0 = arith.constant 0 : i32
    return %c0_i32, %arg1 : i32, i32
  }
  func.func @transform_3(%arg0: i32, %arg1: i32) -> (i32, i32) {
    %c0_i32 = arith.constant 0 : i32
    %c0_i32_0 = arith.constant 0 : i32
    return %arg1, %c0_i32 : i32, i32
  }
  func.func @transform_4(%arg0: i32, %arg1: i32) -> (i32, i32) {
    %c0_i32 = arith.constant 0 : i32
    %c0_i32_0 = arith.constant 0 : i32
    return %arg0, %c0_i32 : i32, i32
  }
}

</mosaic_0001>

<bundles_post_ra>
// kernel: tpu_custom_call.1
= control target key start
LH: loop header
LB: loop body
LE: loop exit
PB: predicated region body
PF: predicated region fallthrough
CT: control target
= control target key end

     0   :  { %9 = vsyncpa [#allocation3], 0  ;;  %s2071_s0 = inlined_call_operand.hbm [shape: f32[128,128], index: 0, kind: input, shape index: {}]   ;;  %s2072_s1 = inlined_call_operand.hbm [shape: f32[128,256], index: 1, kind: input, shape index: {}]   ;;  %s2073_s2 = inlined_call_operand.hbm [shape: f32[128,256], index: 2, kind: input, shape index: {}]   ;;  %s2074_s3 = inlined_call_operand.hbm [shape: f32[256,128], index: 3, kind: input, shape index: {}]   ;;  %s2075_s4 = inlined_call_operand.hbm [shape: f32[128,128], index: 4, kind: output, shape index: {}]  }
   0x1   :  { %11 = vsyncpa [#allocation3 + $0x1], 0 }
   0x2   :  { %12 = vsyncpa [#allocation6], 0 }
   0x3   :  { %13 = vsyncpa [#allocation9], 0 }
   0x4   :  { %14 = vsyncpa [#allocation4], 0 }
   0x5   :  { %16 = vsyncpa [#allocation4 + $0x1], 0  ;;  %s1644_s15 = smov 0   ;;  %s1646_s16 = smov 0  }
   0x6   :  { %s1648_s17 = smov 0   ;;  %s1650_s18 = smov 0  }
   0x7   :  { %s1652_s19 = smov 0   ;;  %s1654_s20 = smov 0  }
   0x8 LB: > { %s1030_s21 = sadd.s32 4294967295, %s1605_s20   ;;  %s1031_s22 = sadd.s32 4294967294, %s1605_s20   ;;  %s1605_s20 = sphi %s1654_s20, %s22_s20   ;;  %s1601_s19 = sphi %s1652_s19, %s2102_s19   ;;  %s1597_s18 = sphi %s1650_s18, %s2101_s18   ;;  %s1593_s17 = sphi %s1648_s17, %s2100_s17   ;;  %s1589_s16 = sphi %s1646_s16, %s2099_s16   ;;  %s1585_s15 = sphi %s1644_s15, %s2098_s15  }
   0x9   : > { %p54_p0 = scmp.ne.s32.totalorder %s1589_s16, %s1585_s15  ;;  %p1678_p1 = scmp.eq.s32.totalorder %s1030_s21, 0 }
   0xa   : > { %p1682_p2 = scmp.eq.s32.totalorder %s1030_s21, 1  ;;  %p162_p3 = scmp.eq.s32.totalorder %s1031_s22, 1 }
   0xb   : > { %s2081_s23 = scalar_select %p1678_p1, 1, 0 }
   0xc   : > { %s2082_s24 = scalar_select %p1682_p2, 1, 0 }
   0xd   : > { %p1688_p4 = por %p1678_p1, %p54_p0  ;;  %p1032_p5 = scmp.ge.s32.totalorder %s1605_s20, 1 }
   0xe   : > { %p1693_p6 = por %p162_p3, %p54_p0  ;;  %p169_p7 = scmp.lt.s32.totalorder %s1605_s20, 3 }
   0xf   : > { %s2083_s25 = scalar_select %p1688_p4, 1, 0 }
  0x10   : > { %s2084_s26 = scalar_select %p1693_p6, 1, 0 }
  0x11   : > { %p1698_p8 = pnand %p1032_p5, %p169_p7  ;;  %s1607_s28 = smov [#allocation5]  }
  0x12   : > { %2085 = sst [smem:[#allocation15_spill]] %s2084_s26  ;;  %s184_s29 = sshll.u32 %s1607_s28, 4  ;;  %s1702_s29 = int_to_ptr.vmem [resolvable:$true] %s184_s29 }
  0x13   : > { %s2086_s27 = scalar_select %p1698_p8, 1, 0 }
  0x14   : > { %p1253_p9 = pneg %p1698_p8  ;;  %s1608_s5 = smov [#allocation7]  }
  0x15   : > { %s200_s6 = sshll.u32 %s1608_s5, 4  ;;  %s1609_s7 = smov [#allocation8]   ;;  %s1713_s6 = int_to_ptr.vmem [resolvable:$true] %s200_s6 }
  0x16   : > { %p1709_p11 = pnand %p1253_p9, %p1678_p1  ;;  %s1715_s8 = sshll.u32 %s1609_s7, 4  ;;  %s217_s8 = int_to_ptr.vmem [resolvable:$true] %s1715_s8 }
  0x17   : > { %s1401_s11 = scalar_lea.hbm %s2072_s1, 4096 }
  0x18   : > { %p1402_p12 = scmp.ne.s32.totalorder %s2072_s1, %s1401_s11  ;;  %p1725_p13 = pneg %p1709_p11 }
  0x19   : > { %p1408_p5 = scmp.lt.u32.totalorder %s1401_s11, %s2072_s1 }
  0x1a   : > { %p1404_p0 = pnand %p1725_p13, %p1402_p12 }
  0x1c   : > { %p1405_p3 = pneg %p1404_p0 }
  0x1e   : > { %p1410_p7 = pnand %p1408_p5, %p1405_p3 }
  0x20   : > { %1413 = shalt.err (!%p1410_p7)
}
  0x21   : > { %s1414_s28 = scalar_lea.vmem %s1702_s29, 4096  ;;  %p1422_p1 = scmp.lt.s32.totalorder %s1702_s29, %s1702_s29 }
  0x22   : > { %p1415_p9 = scmp.ne.s32.totalorder %s1702_s29, %s1414_s28  ;;  %p1423_p4 = scmp.lt.s32.totalorder %s1414_s28, %s1414_s28 }
  0x24   : > { %p1417_p10 = pnand %p1415_p9, %p1725_p13  ;;  %p1424_p12 = por %p1423_p4, %p1422_p1 }
  0x26   : > { %p1418_p6 = pneg %p1417_p10 }
  0x28   : > { %p1425_p0 = pnand %p1424_p12, %p1418_p6 }
  0x2a   : > { %1428 = shalt.err (!%p1425_p0)
}
  0x2b   : > { %s1610_s5 = smov 256   ;;  %s1611_s7 = smov 16  }
  0x2c   : > { %1256 = dma.hbm_to_vmem [thread:$0]  (!%p1709_p11), %s2072_s1, 4096, %s1702_s29, [#allocation6], %s1610_s5, %s1610_s5, %s1611_s7  }
  0x2d   : > { %s1429_s13 = scalar_lea.hbm %s2073_s2, 4096 }
  0x2e   : > { %p1430_p1 = scmp.ne.s32.totalorder %s2073_s2, %s1429_s13  ;;  %p1436_p10 = scmp.lt.u32.totalorder %s1429_s13, %s2073_s2 }
  0x30   : > { %p1432_p4 = pnand %p1430_p1, %p1725_p13 }
  0x32   : > { %p1433_p6 = pneg %p1432_p4 }
  0x34   : > { %p1438_p3 = pnand %p1436_p10, %p1433_p6 }
  0x36   : > { %1441 = shalt.err (!%p1438_p3)
}
  0x37   : > { %s1442_s29 = scalar_lea.vmem %s1713_s6, 4096  ;;  %p1450_p12 = scmp.lt.s32.totalorder %s1713_s6, %s1713_s6 }
  0x38   : > { %p1443_p5 = scmp.ne.s32.totalorder %s1713_s6, %s1442_s29  ;;  %p1451_p0 = scmp.lt.s32.totalorder %s1442_s29, %s1442_s29 }
  0x3a   : > { %p1445_p7 = pnand %p1443_p5, %p1725_p13  ;;  %p1452_p1 = por %p1451_p0, %p1450_p12 }
  0x3c   : > { %p1446_p9 = pneg %p1445_p7 }
  0x3e   : > { %p1453_p4 = pnand %p1452_p1, %p1446_p9 }
  0x40   : > { %1456 = shalt.err (!%p1453_p4)
}
  0x41   : > { %1259 = dma.hbm_to_vmem [thread:$0]  (!%p1709_p11), %s2073_s2, 4096, %s1713_s6, [#allocation6], %s1610_s5, %s1610_s5, %s1611_s7  }
  0x42   : > { %s1457_s12 = scalar_lea.hbm %s2074_s3, 4096 }
  0x43   : > { %p1458_p6 = scmp.ne.s32.totalorder %s2074_s3, %s1457_s12  ;;  %p1464_p5 = scmp.lt.u32.totalorder %s1457_s12, %s2074_s3 }
  0x45   : > { %p1460_p10 = pnand %p1458_p6, %p1725_p13 }
  0x47   : > { %p1461_p3 = pneg %p1460_p10 }
  0x49   : > { %p1466_p7 = pnand %p1464_p5, %p1461_p3 }
  0x4b   : > { %1469 = shalt.err (!%p1466_p7)
}
  0x4c   : > { %s1470_s29 = scalar_lea.vmem %s217_s8, 4096  ;;  %p1478_p1 = scmp.lt.s32.totalorder %s217_s8, %s217_s8 }
  0x4d   : > { %p1471_p9 = scmp.ne.s32.totalorder %s217_s8, %s1470_s29  ;;  %p1479_p4 = scmp.lt.s32.totalorder %s1470_s29, %s1470_s29 }
  0x4f   : > { %p1473_p12 = pnand %p1471_p9, %p1725_p13  ;;  %p1480_p8 = por %p1479_p4, %p1478_p1 }
  0x51   : > { %p1474_p0 = pneg %p1473_p12 }
  0x53   : > { %p1481_p2 = pnand %p1480_p8, %p1474_p0 }
  0x55   : > { %1484 = shalt.err (!%p1481_p2)
}
  0x56   : > { %s1612_s6 = smov 128   ;;  %s1613_s14 = smov 8  }
  0x57   : > { %1262 = dma.hbm_to_vmem [thread:$0]  (!%p1709_p11), %s2074_s3, 4096, %s217_s8, [#allocation9], %s1612_s6, %s1612_s6, %s1613_s14  }
  0x58   : > { %s41_s26 = sadd.s32 1, %s1593_s17  ;;  %s34_s9 = sadd.s32 1, %s1601_s19 }
  0x59   : > { %p48_p2 = scmp.ne.s32.totalorder %s1593_s17, %s1589_s16  ;;  %p36_p8 = scmp.ge.s32.totalorder %s34_s9, 2 }
  0x5a   : > { %p49_p13 = scmp.eq.s32.totalorder %s1605_s20, 0  ;;  %p2089_p6 = scmp.ne.s32.totalorder %s2082_s24, 0 }
  0x5b   : > { %p1274_p3 = scmp.lt.s32.totalorder %s1605_s20, 2  ;;  %s2104_s9 = smov (%p36_p8, %s34_s9), 0 }
  0x5c   : > { %p1798_p10 = por %p2089_p6, %p48_p2  ;;  %p50_p5 = por %p49_p13, %p48_p2 }
  0x5d   : > { %s230_s30 = sand.u32 1, %s1593_s17   ;;  %s38_s11 = ssub.s32 %s1601_s19, %s2104_s9 }
  0x5e   : > { %p39_p7 = scmp.eq.s32.totalorder %s38_s11, 0  ;;  %s1037_s8 = sshll.u32 %s230_s30, 6 }
  0x5f   : > { %s1067_s12 = sshll.u32 %s1601_s19, 10  ;;  %s234_s28 = scalar_lea.vmem [#allocation2], %s1037_s8 }
  0x60   : > { %s1810_s13 = scalar_select %p39_p7, %s1593_s17, %s41_s26  }
  0x61   : > { %s1815_s24 = scalar_lea.hbm %s2071_s0, %s1067_s12  ;;  %s241_s29 = sshll.u32 %s234_s28, 4  ;;  %s1817_s29 = int_to_ptr.vmem [resolvable:$true] %s241_s29 }
  0x62   : > { %p1821_p11 = pnand %p1274_p3, %p50_p5  ;;  %s1825_s7 = scalar_lea.sflag [#allocation3], %s230_s30 }
  0x63   : > { %s1485_s26 = scalar_lea.hbm %s1815_s24, 1024  ;;  %s1490_s12 = scalar_lea.hbm %s2071_s0, 2048 }
  0x64   : > { %p1486_p9 = scmp.ne.s32.totalorder %s1815_s24, %s1485_s26  ;;  %p1487_p12 = pneg %p1821_p11 }
  0x65   : > { %p1491_p4 = scmp.lt.u32.totalorder %s1815_s24, %s2071_s0  ;;  %p1492_p2 = scmp.lt.u32.totalorder %s1490_s12, %s1485_s26 }
  0x66   : > { %p1488_p0 = pnand %p1487_p12, %p1486_p9  ;;  %p1494_p13 = scmp.lt.u32.totalorder %s1485_s26, %s1815_s24 }
  0x67   : > { %p1493_p8 = por %p1492_p2, %p1491_p4 }
  0x68   : > { %p1489_p1 = pneg %p1488_p0 }
  0x69   : > { %p1495_p6 = por %p1494_p13, %p1493_p8 }
  0x6b   : > { %p1496_p3 = pnand %p1495_p6, %p1489_p1 }
  0x6d   : > { %1499 = shalt.err (!%p1496_p3)
}
  0x6e   : > { %s1500_s30 = scalar_lea.vmem %s1817_s29, 1024  ;;  %s1614_s28 = smov [#allocation2]  }
  0x6f   : > { %p1501_p5 = scmp.ne.s32.totalorder %s1817_s29, %s1500_s30  ;;  %s1505_s11 = sshll.u32 %s1614_s28, 4  ;;  %s1506_s11 = int_to_ptr.vmem [resolvable:$false] %s1505_s11 }
  0x70   : > { %s1507_s8 = scalar_lea.vmem %s1506_s11, 2048  ;;  %p1508_p0 = scmp.lt.s32.totalorder %s1817_s29, %s1506_s11 }
  0x71   : > { %p1503_p7 = pnand %p1501_p5, %p1487_p12  ;;  %p1509_p4 = scmp.lt.s32.totalorder %s1507_s8, %s1500_s30 }
  0x73   : > { %p1504_p9 = pneg %p1503_p7  ;;  %p1510_p2 = por %p1509_p4, %p1508_p0 }
  0x75   : > { %p1511_p8 = pnand %p1510_p2, %p1504_p9 }
  0x77   : > { %1514 = shalt.err (!%p1511_p8)
}
  0x78   : > { %1266 = dma.hbm_to_vmem [thread:$0]  (!%p1821_p11), %s1815_s24, 1024, %s1817_s29, %s1825_s7, %s1612_s6, %s1612_s6, %s1613_s14  }
  0x79   : > { %p2092_p12 = scmp.ne.s32.totalorder %s2086_s27, 0 }
  0x7a   : > { %s1859_s26 = sand.u32 (!%p2092_p12), 1, %s1589_s16   ;;  %p2093_p1 = scmp.ne.s32.totalorder (!%p2092_p12), %s2083_s25, 0 }
  0x7b   : > { %253 = sbr.rel (%p2092_p12) target bundleno = 675 (0x2a3), region = 36  ;;  %s1041_s12 = sshll.u32 (!%p2092_p12), %s1859_s26, 6 }
  0x7c   : > { %s256_s21 = scalar_lea.sflag (!%p2092_p12), [#allocation3], %s1859_s26  ;;  %s1865_s5 = scalar_lea.vmem (!%p2092_p12), [#allocation2], %s1041_s12 }
  0x82   : > { %1568 = dma.done.wait (%p2093_p1), %s256_s21, 1024  }
  0x83   : > { %1570 = vsyncadd (%p2093_p1), %s256_s21, 4294966272  ;;  %p2094_p11 = scmp.ne.s32.totalorder %s2081_s23, 0 }
  0x85   : > { %1572 = dma.done.wait (%p2094_p11), [#allocation6], 8192  }
  0x86   : > { %1574 = vsyncadd (%p2094_p11), [#allocation6], 4294959104 }
  0x87   : > { %1576 = dma.done.wait (%p2094_p11), [#allocation9], 4096  }
  0x88   : > { %1578 = vsyncadd (%p2094_p11), [#allocation9], 4294963200  ;;  %v1615_v0 = vmov 0.0   ;;  %v467_v1 = vld [vmem:[#allocation7 + $0x8] sm:$0xff]  ;;  %v469_v2 = vld [vmem:[#allocation7 + $0x18] sm:$0xff]  ;;  %s2005_s23 = scalar_lea.vmem [#allocation10], %s1041_s12 }
  0x89   : > { %562 = vmatprep.mubr.f32.mxu1 %v1615_v0  ;;  %417 = vmatprep.mubr.f32.mxu0 %v1615_v0  ;;  %v466_v3 = vld [vmem:[#allocation7] sm:$0xff]  ;;  %v1157_v4 = vpack.c.bf16 %v469_v2, %v467_v1  ;;  %v468_v5 = vld [vmem:[#allocation7 + $0x10] sm:$0xff]  ;;  %v471_v6 = vld [vmem:[#allocation7 + $0x28] sm:$0xff]  ;;  %s1068_s25 = sshll.u32 %s1597_s18, 10  ;;  %s914_s27 = sshll.u32 %s2005_s23, 4  ;;  %s2021_s27 = int_to_ptr.vmem [resolvable:$true] %s914_s27 }
  0x8a   : > { %v473_v7 = vld [vmem:[#allocation7 + $0x38] sm:$0xff]  ;;  %v1159_v8 = vpack.c.bf16 %v468_v5, %v466_v3  ;;  %v470_v10 = vld [vmem:[#allocation7 + $0x20] sm:$0xff]  ;;  %v472_v11 = vld [vmem:[#allocation7 + $0x30] sm:$0xff]  ;;  %s2019_s24 = scalar_lea.hbm %s2075_s4, %s1068_s25  ;;  %s901_s29 = scalar_lea.sflag [#allocation4], %s1859_s26 }
  0x8b   : > { %v1161_v9 = vpack.c.bf16 %v473_v7, %v471_v6  ;;  %v475_v12 = vld [vmem:[#allocation7 + $0x48] sm:$0xff]  ;;  %1158 = vmatprep.subr.bf16.mxu1 %v1157_v4  ;;  %v477_v13 = vld [vmem:[#allocation7 + $0x58] sm:$0xff]  ;;  %v1163_v14 = vpack.c.bf16 %v472_v11, %v470_v10  ;;  %v474_v16 = vld [vmem:[#allocation7 + $0x40] sm:$0xff]  ;;  %s1515_s7 = scalar_lea.vmem %s2021_s27, 1024  ;;  %s1616_s18 = smov [#allocation10]  }
  0x8c   : > { %1160 = vmatpush1.bf16.msra.mxu1 %v1159_v8  ;;  %v1165_v15 = vpack.c.bf16 %v477_v13, %v475_v12  ;;  %v476_v17 = vld [vmem:[#allocation7 + $0x50] sm:$0xff]  ;;  %v479_v18 = vld [vmem:[#allocation7 + $0x68] sm:$0xff]  ;;  %v481_v19 = vld [vmem:[#allocation7 + $0x78] sm:$0xff]  ;;  %p1516_p13 = scmp.ne.s32.totalorder %s2021_s27, %s1515_s7  ;;  %s1519_s22 = sshll.u32 %s1616_s18, 4  ;;  %s1520_s22 = int_to_ptr.vmem [resolvable:$false] %s1519_s22 }
  0x8d   : > { %1162 = vmatprep.subr.bf16.mxu1 %v1161_v9  ;;  %v1167_v20 = vpack.c.bf16 %v476_v17, %v474_v16  ;;  %v478_v21 = vld [vmem:[#allocation7 + $0x60] sm:$0xff]  ;;  %v480_v22 = vld [vmem:[#allocation7 + $0x70] sm:$0xff]  ;;  %v1169_v23 = vpack.c.bf16 %v481_v19, %v479_v18  ;;  %v483_v24 = vld [vmem:[#allocation7 + $0x88] sm:$0xff]  ;;  %s1521_s30 = scalar_lea.vmem %s1520_s22, 2048  ;;  %p1522_p5 = scmp.lt.s32.totalorder %s2021_s27, %s1520_s22 }
  0x8e   : > { %v322_v25 = vld [vmem:[#allocation5 + $0x8] sm:$0xff]  ;;  %v324_v26 = vld [vmem:[#allocation5 + $0x18] sm:$0xff]  ;;  %v321_v29 = vld [vmem:[#allocation5] sm:$0xff]  ;;  %v1171_v34 = vpack.c.bf16 %v480_v22, %v478_v21  ;;  %p1517_p6 = pnand %p1516_p13, %p1798_p10  ;;  %p1523_p7 = scmp.lt.s32.totalorder %s1521_s30, %s1515_s7 }
  0x8f   : > { %v485_v27 = vld [vmem:[#allocation7 + $0x98] sm:$0xff]  ;;  %v1125_v28 = vpack.c.bf16 %v324_v26, %v322_v25  ;;  %v323_v30 = vld [vmem:[#allocation5 + $0x10] sm:$0xff]  ;;  %v482_v31 = vld [vmem:[#allocation7 + $0x80] sm:$0xff] }
  0x90   : > { %1164 = vmatpush1.bf16.msra.mxu1 %v1163_v14  ;;  %v484_v32 = vld [vmem:[#allocation7 + $0x90] sm:$0xff]  ;;  %v1127_v33 = vpack.c.bf16 %v323_v30, %v321_v29  ;;  %v487_v35 = vld [vmem:[#allocation7 + $0xa8] sm:$0xff]  ;;  %v328_v37 = vld [vmem:[#allocation5 + $0x38] sm:$0xff]  ;;  %v1173_v39 = vpack.c.bf16 %v485_v27, %v483_v24  ;;  %p1518_p3 = pneg %p1517_p6  ;;  %p1524_p9 = por %p1523_p7, %p1522_p5 }
  0x91   : > { %1166 = vmatprep.subr.bf16.mxu1 %v1165_v15  ;;  %1126 = vmatprep.subr.bf16.mxu0 %v1125_v28  ;;  %v326_v36 = vld [vmem:[#allocation5 + $0x28] sm:$0xff]  ;;  %v325_v38 = vld [vmem:[#allocation5 + $0x20] sm:$0xff]  ;;  %v489_v40 = vld [vmem:[#allocation7 + $0xb8] sm:$0xff]  ;;  %v1175_v51 = vpack.c.bf16 %v484_v32, %v482_v31 }
  0x92   : > { %1128 = vmatpush1.bf16.msra.mxu0 %v1127_v33  ;;  %v1129_v41 = vpack.c.bf16 %v328_v37, %v326_v36  ;;  %v327_v42 = vld [vmem:[#allocation5 + $0x30] sm:$0xff]  ;;  %v330_v43 = vld [vmem:[#allocation5 + $0x48] sm:$0xff]  ;;  %v332_v45 = vld [vmem:[#allocation5 + $0x58] sm:$0xff]  ;;  %v1177_v52 = vpack.c.bf16 %v489_v40, %v487_v35  ;;  %p1525_p0 = pnand %p1524_p9, %p1518_p3 }
  0x93   : > { %v1131_v44 = vpack.c.bf16 %v327_v42, %v325_v38  ;;  %v329_v46 = vld [vmem:[#allocation5 + $0x40] sm:$0xff]  ;;  %v331_v47 = vld [vmem:[#allocation5 + $0x50] sm:$0xff]  ;;  %v1133_v48 = vpack.c.bf16 %v332_v45, %v330_v43  ;;  %v334_v49 = vld [vmem:[#allocation5 + $0x68] sm:$0xff] }
  0x94   : > { %1168 = vmatpush1.bf16.msra.mxu1 %v1167_v20  ;;  %1130 = vmatprep.subr.bf16.mxu0 %v1129_v41  ;;  %v336_v50 = vld [vmem:[#allocation5 + $0x78] sm:$0xff]  ;;  %v486_v53 = vld [vmem:[#allocation7 + $0xa0] sm:$0xff]  ;;  %v488_v54 = vld [vmem:[#allocation7 + $0xb0] sm:$0xff]  ;;  %v1135_v56 = vpack.c.bf16 %v331_v47, %v329_v46 }
  0x95   : > { %1170 = vmatprep.subr.bf16.mxu1 %v1169_v23  ;;  %v491_v55 = vld [vmem:[#allocation7 + $0xc8] sm:$0xff]  ;;  %v493_v57 = vld [vmem:[#allocation7 + $0xd8] sm:$0xff]  ;;  %v1137_v58 = vpack.c.bf16 %v336_v50, %v334_v49  ;;  %v333_v59 = vld [vmem:[#allocation5 + $0x60] sm:$0xff]  ;;  %v1179_v63 = vpack.c.bf16 %v488_v54, %v486_v53 }
  0x96   : > { %1132 = vmatpush1.bf16.msra.mxu0 %v1131_v44  ;;  %v335_v60 = vld [vmem:[#allocation5 + $0x70] sm:$0xff]  ;;  %v338_v61 = vld [vmem:[#allocation5 + $0x88] sm:$0xff]  ;;  %v340_v62 = vld [vmem:[#allocation5 + $0x98] sm:$0xff]  ;;  %v1181_v1 = vpack.c.bf16 %v493_v57, %v491_v55 }
  0x97   : > { %1134 = vmatprep.subr.bf16.mxu0 %v1133_v48  ;;  %v490_v2 = vld [vmem:[#allocation7 + $0xc0] sm:$0xff]  ;;  %v492_v3 = vld [vmem:[#allocation7 + $0xd0] sm:$0xff]  ;;  %v495_v4 = vld [vmem:[#allocation7 + $0xe8] sm:$0xff]  ;;  %v1139_v5 = vpack.c.bf16 %v335_v60, %v333_v59  ;;  %v1141_v7 = vpack.c.bf16 %v340_v62, %v338_v61 }
  0x98   : > { %1172 = vmatpush1.bf16.msra.mxu1 %v1171_v34  ;;  %v497_v6 = vld [vmem:[#allocation7 + $0xf8] sm:$0xff]  ;;  %v337_v8 = vld [vmem:[#allocation5 + $0x80] sm:$0xff]  ;;  %v339_v9 = vld [vmem:[#allocation5 + $0x90] sm:$0xff]  ;;  %v1183_v12 = vpack.c.bf16 %v492_v3, %v490_v2 }
  0x99   : > { %1174 = vmatprep.subr.bf16.mxu1 %v1173_v39  ;;  %v342_v10 = vld [vmem:[#allocation5 + $0xa8] sm:$0xff]  ;;  %v344_v11 = vld [vmem:[#allocation5 + $0xb8] sm:$0xff]  ;;  %v1185_v13 = vpack.c.bf16 %v497_v6, %v495_v4  ;;  %v494_v14 = vld [vmem:[#allocation7 + $0xe0] sm:$0xff]  ;;  %v1143_v16 = vpack.c.bf16 %v339_v9, %v337_v8 }
  0x9a   : > { %1136 = vmatpush1.bf16.msra.mxu0 %v1135_v56  ;;  %v496_v15 = vld [vmem:[#allocation7 + $0xf0] sm:$0xff]  ;;  %v1145_v17 = vpack.c.bf16 %v344_v11, %v342_v10  ;;  %v341_v18 = vld [vmem:[#allocation5 + $0xa0] sm:$0xff]  ;;  %v346_v20 = vld [vmem:[#allocation5 + $0xc8] sm:$0xff] }
  0x9b   : > { %1138 = vmatprep.subr.bf16.mxu0 %v1137_v58  ;;  %v343_v19 = vld [vmem:[#allocation5 + $0xb0] sm:$0xff]  ;;  %v348_v21 = vld [vmem:[#allocation5 + $0xd8] sm:$0xff]  ;;  %v1187_v22 = vpack.c.bf16 %v496_v15, %v494_v14  ;;  %v345_v25 = vld [vmem:[#allocation5 + $0xc0] sm:$0xff] }
  0x9c   : > { %1176 = vmatpush1.bf16.msra.mxu1 %v1175_v51  ;;  %v1147_v23 = vpack.c.bf16 %v343_v19, %v341_v18  ;;  %v1149_v24 = vpack.c.bf16 %v348_v21, %v346_v20  ;;  %v347_v26 = vld [vmem:[#allocation5 + $0xd0] sm:$0xff]  ;;  %v350_v27 = vld [vmem:[#allocation5 + $0xe8] sm:$0xff]  ;;  %v352_v28 = vld [vmem:[#allocation5 + $0xf8] sm:$0xff] }
  0x9d   : > { %1178 = vmatprep.subr.bf16.mxu1 %v1177_v52  ;;  %v313_v29 = vld [vmem:[%s1865_s5] sm:$0xff]  ;;  %v1151_v30 = vpack.c.bf16 %v347_v26, %v345_v25  ;;  %v1153_v31 = vpack.c.bf16 %v352_v28, %v350_v27  ;;  %v351_v33 = vld [vmem:[#allocation5 + $0xf0] sm:$0xff]  ;;  %v314_v34 = vld [vmem:[%s1865_s5 + $0x8] sm:$0xff] }
  0x9e   : > { %1140 = vmatpush1.bf16.msra.mxu0 %v1139_v5  ;;  %v349_v32 = vld [vmem:[#allocation5 + $0xe0] sm:$0xff]  ;;  %v315_v36 = vld [vmem:[%s1865_s5 + $0x10] sm:$0xff]  ;;  %v316_v37 = vld [vmem:[%s1865_s5 + $0x18] sm:$0xff] }
  0x9f   : > { %1142 = vmatprep.subr.bf16.mxu0 %v1141_v7  ;;  %v1155_v35 = vpack.c.bf16 %v351_v33, %v349_v32  ;;  %v317_v38 = vld [vmem:[%s1865_s5 + $0x20] sm:$0xff]  ;;  %v318_v39 = vld [vmem:[%s1865_s5 + $0x28] sm:$0xff]  ;;  %v319_v40 = vld [vmem:[%s1865_s5 + $0x30] sm:$0xff] }
  0xa0   : > { %1180 = vmatpush1.bf16.msra.mxu1 %v1179_v63  ;;  %v320_v41 = vld [vmem:[%s1865_s5 + $0x38] sm:$0xff]  ;;  %v763_v42 = vld [vmem:[#allocation8 + $0x80] sm:$0xff]  ;;  %v764_v43 = vld [vmem:[#allocation8 + $0x88] sm:$0xff] }
  0xa1   : > { %1182 = vmatprep.subr.bf16.mxu1 %v1181_v1  ;;  %v1189_v44 = vpack.c.bf16 %v764_v43, %v763_v42  ;;  %v747_v45 = vld [vmem:[#allocation8] sm:$0xff]  ;;  %v748_v46 = vld [vmem:[#allocation8 + $0x8] sm:$0xff]  ;;  %v765_v48 = vld [vmem:[#allocation8 + $0x90] sm:$0xff] }
  0xa2   : > { %1144 = vmatpush1.bf16.msra.mxu0 %v1143_v16  ;;  %v1191_v47 = vpack.c.bf16 %v748_v46, %v747_v45  ;;  %v766_v49 = vld [vmem:[#allocation8 + $0x98] sm:$0xff]  ;;  %v749_v51 = vld [vmem:[#allocation8 + $0x10] sm:$0xff]  ;;  %v768_v54 = vld [vmem:[#allocation8 + $0xa8] sm:$0xff] }
  0xa3   : > { %1146 = vmatprep.subr.bf16.mxu0 %v1145_v17  ;;  %v1193_v50 = vpack.c.bf16 %v766_v49, %v765_v48  ;;  %v750_v52 = vld [vmem:[#allocation8 + $0x18] sm:$0xff]  ;;  %v751_v56 = vld [vmem:[#allocation8 + $0x20] sm:$0xff]  ;;  %v752_v57 = vld [vmem:[#allocation8 + $0x28] sm:$0xff] }
  0xa4   : > { %1184 = vmatpush1.bf16.msra.mxu1 %v1183_v12  ;;  %v1195_v53 = vpack.c.bf16 %v750_v52, %v749_v51  ;;  %v1199_v58 = vpack.c.bf16 %v752_v57, %v751_v56  ;;  %v769_v59 = vld [vmem:[#allocation8 + $0xb0] sm:$0xff]  ;;  %v770_v60 = vld [vmem:[#allocation8 + $0xb8] sm:$0xff]  ;;  %v771_v2 = vld [vmem:[#allocation8 + $0xc0] sm:$0xff] }
  0xa5   : > { %1186 = vmatprep.subr.bf16.mxu1 %v1185_v13  ;;  %v1201_v61 = vpack.c.bf16 %v770_v60, %v769_v59  ;;  %v753_v62 = vld [vmem:[#allocation8 + $0x30] sm:$0xff]  ;;  %v754_v63 = vld [vmem:[#allocation8 + $0x38] sm:$0xff]  ;;  %v772_v3 = vld [vmem:[#allocation8 + $0xc8] sm:$0xff] }
  0xa6   : > { %1148 = vmatpush1.bf16.msra.mxu0 %v1147_v23  ;;  %v1203_v1 = vpack.c.bf16 %v754_v63, %v753_v62  ;;  %v1205_v4 = vpack.c.bf16 %v772_v3, %v771_v2  ;;  %v755_v5 = vld [vmem:[#allocation8 + $0x40] sm:$0xff]  ;;  %v756_v6 = vld [vmem:[#allocation8 + $0x48] sm:$0xff]  ;;  %v773_v8 = vld [vmem:[#allocation8 + $0xd0] sm:$0xff] }
  0xa7   : > { %1150 = vmatprep.subr.bf16.mxu0 %v1149_v24  ;;  %v1207_v7 = vpack.c.bf16 %v756_v6, %v755_v5  ;;  %v774_v9 = vld [vmem:[#allocation8 + $0xd8] sm:$0xff]  ;;  %v757_v11 = vld [vmem:[#allocation8 + $0x50] sm:$0xff]  ;;  %v775_v14 = vld [vmem:[#allocation8 + $0xe0] sm:$0xff] }
  0xa8   : > { %1188 = vmatpush1.bf16.msra.mxu1 %v1187_v22  ;;  %v1209_v10 = vpack.c.bf16 %v774_v9, %v773_v8  ;;  %v758_v12 = vld [vmem:[#allocation8 + $0x58] sm:$0xff]  ;;  %v776_v15 = vld [vmem:[#allocation8 + $0xe8] sm:$0xff]  ;;  %v759_v17 = vld [vmem:[#allocation8 + $0x60] sm:$0xff] }
  0xa9   : > { %1221 = vmatprep.subr.bf16.mxu1 %v1189_v44  ;;  %v1211_v13 = vpack.c.bf16 %v758_v12, %v757_v11  ;;  %v1213_v16 = vpack.c.bf16 %v776_v15, %v775_v14  ;;  %v760_v18 = vld [vmem:[#allocation8 + $0x68] sm:$0xff]  ;;  %v777_v20 = vld [vmem:[#allocation8 + $0xf0] sm:$0xff]  ;;  %v778_v21 = vld [vmem:[#allocation8 + $0xf8] sm:$0xff] }
  0xaa   : > { %1152 = vmatpush1.bf16.msra.mxu0 %v1151_v30  ;;  %v1215_v19 = vpack.c.bf16 %v760_v18, %v759_v17  ;;  %v1217_v22 = vpack.c.bf16 %v778_v21, %v777_v20  ;;  %v761_v23 = vld [vmem:[#allocation8 + $0x70] sm:$0xff]  ;;  %v762_v24 = vld [vmem:[#allocation8 + $0x78] sm:$0xff] }
  0xab   : > { %563 = vmatmul.mubr.f32.vlgmr.msra.gmra.mrb[0].mxu1 %v313_v29  ;;  %1154 = vmatprep.subr.bf16.mxu0 %v1153_v31  ;;  %v1219_v25 = vpack.c.bf16 %v762_v24, %v761_v23 }
  0xac   : > { %568 = vmatprep.mubr.f32.mxu1 %v1615_v0  ;;  %1229 = vmatpush3.bf16.msra.mxu1 %v1191_v47 }
  0xad   : > { %1222 = vmatprep.subr.bf16.mxu1 %v1193_v50 }
  0xae   : > { %1156 = vmatpush1.bf16.msra.mxu0 %v1155_v35 }
  0xaf   : > { %569 = vmatmul.mubr.f32.gmra.mrb[2].mxu1 %v314_v34  ;;  %1190 = vmatprep.subr.bf16.mxu0 %v1189_v44 }
  0xb0   : > { %574 = vmatprep.mubr.f32.mxu1 %v1615_v0  ;;  %1230 = vmatpush3.bf16.msra.mxu1 %v1195_v53 }
  0xb1   : > { %418 = vmatmul.mubr.f32.vlgmr.msra.gmra.mrb[0].mxu0 %v313_v29 }
  0xb2   : > { %423 = vmatprep.mubr.f32.mxu0 %v1615_v0  ;;  %1192 = vmatpush3.bf16.msra.mxu0 %v1191_v47 }
  0xb3   : > { %575 = vmatmul.mubr.f32.gmra.mrb[4].mxu1 %v315_v36  ;;  %1194 = vmatprep.subr.bf16.mxu0 %v1193_v50 }
  0xb4   : > { %580 = vmatprep.mubr.f32.mxu1 %v1615_v0 }
  0xb5   : > { %424 = vmatmul.mubr.f32.gmra.mrb[2].mxu0 %v314_v34 }
  0xb6   : > { %429 = vmatprep.mubr.f32.mxu0 %v1615_v0  ;;  %1196 = vmatpush3.bf16.msra.mxu0 %v1195_v53 }
  0xb7   : > { %581 = vmatmul.mubr.f32.gmra.mrb[6].mxu1 %v316_v37 }
  0xb8   : > { %586 = vmatprep.mubr.f32.mxu1 %v1615_v0 }
  0xb9   : > { %430 = vmatmul.mubr.f32.gmra.mrb[4].mxu0 %v315_v36 }
  0xba   : > { %435 = vmatprep.mubr.f32.mxu0 %v1615_v0 }
  0xbb   : > { %587 = vmatmul.mubr.f32.gmra.mrb[8].mxu1 %v317_v38 }
  0xbc   : > { %592 = vmatprep.mubr.f32.mxu1 %v1615_v0 }
  0xbd   : > { %436 = vmatmul.mubr.f32.gmra.mrb[6].mxu0 %v316_v37 }
  0xbe   : > { %441 = vmatprep.mubr.f32.mxu0 %v1615_v0 }
  0xbf   : > { %593 = vmatmul.mubr.f32.gmra.mrb[10].mxu1 %v318_v39 }
  0xc0   : > { %598 = vmatprep.mubr.f32.mxu1 %v1615_v0 }
  0xc1   : > { %442 = vmatmul.mubr.f32.gmra.mrb[8].mxu0 %v317_v38 }
  0xc2   : > { %447 = vmatprep.mubr.f32.mxu0 %v1615_v0 }
  0xc3   : > { %599 = vmatmul.mubr.f32.gmra.mrb[12].mxu1 %v319_v40 }
  0xc4   : > { %604 = vmatprep.mubr.f32.mxu1 %v1615_v0 }
  0xc5   : > { %448 = vmatmul.mubr.f32.gmra.mrb[10].mxu0 %v318_v39 }
  0xc6   : > { %453 = vmatprep.mubr.f32.mxu0 %v1615_v0 }
  0xc7   : > { %605 = vmatmul.mubr.f32.gmra.mrb[14].mxu1 %v320_v41 }
  0xc9   : > { %454 = vmatmul.mubr.f32.gmra.mrb[12].mxu0 %v319_v40 }
  0xca   : > { %459 = vmatprep.mubr.f32.mxu0 %v1615_v0  ;;  %v767_v0 = vld [vmem:[#allocation8 + $0xa0] sm:$0xff] }
  0xcb   : > { %v1197_v55 = vpack.c.bf16 %v768_v54, %v767_v0 }
  0xcd   : > { %460 = vmatmul.mubr.f32.gmra.mrb[14].mxu0 %v320_v41  ;;  %1198 = vmatprep.subr.bf16.mxu0 %v1197_v55 }
  0xce   : > { %1223 = vmatprep.subr.bf16.mxu1 %v1197_v55  ;;  %1200 = vmatpush3.bf16.msra.mxu0 %v1199_v58 }
  0xcf   : > { %1231 = vmatpush3.bf16.msra.mxu1 %v1199_v58  ;;  %1202 = vmatprep.subr.bf16.mxu0 %v1201_v61 }
  0xd0   : > { %1224 = vmatprep.subr.bf16.mxu1 %v1201_v61 }
  0xd2   : > { %1204 = vmatpush3.bf16.msra.mxu0 %v1203_v1 }
  0xd3   : > { %1232 = vmatpush3.bf16.msra.mxu1 %v1203_v1  ;;  %1206 = vmatprep.subr.bf16.mxu0 %v1205_v4 }
  0xd4   : > { %1225 = vmatprep.subr.bf16.mxu1 %v1205_v4 }
  0xd6   : > { %1208 = vmatpush3.bf16.msra.mxu0 %v1207_v7 }
  0xd7   : > { %1233 = vmatpush3.bf16.msra.mxu1 %v1207_v7  ;;  %1210 = vmatprep.subr.bf16.mxu0 %v1209_v10 }
  0xd8   : > { %1226 = vmatprep.subr.bf16.mxu1 %v1209_v10 }
  0xda   : > { %1212 = vmatpush3.bf16.msra.mxu0 %v1211_v13 }
  0xdb   : > { %1234 = vmatpush3.bf16.msra.mxu1 %v1211_v13  ;;  %1214 = vmatprep.subr.bf16.mxu0 %v1213_v16 }
  0xdc   : > { %1227 = vmatprep.subr.bf16.mxu1 %v1213_v16 }
  0xde   : > { %1216 = vmatpush3.bf16.msra.mxu0 %v1215_v19 }
  0xdf   : > { %1235 = vmatpush3.bf16.msra.mxu1 %v1215_v19  ;;  %1218 = vmatprep.subr.bf16.mxu0 %v1217_v22 }
  0xe0   : > { %1228 = vmatprep.subr.bf16.mxu1 %v1217_v22 }
  0xe2   : > { %1220 = vmatpush3.bf16.msra.mxu0 %v1219_v25 }
  0xe3   : > { %1236 = vmatpush3.bf16.msra.mxu1 %v1219_v25 }
 0x17e   : > { %v1903_v26 = vpop.f32.mrb[0].mxu1 }
 0x17f   : > { %v1046_v27 = vmul.f32 -1.442695, %v1903_v26  ;;  %v1906_v28 = vpop.f32.mrb[1].mxu1 }
 0x180   : > { %v1047_v29 = vmul.f32 -1.442695, %v1906_v28 }
 0x181   : > { %1337 = vpow2.f32 %v1046_v27 }
 0x182   : > { %1339 = vpow2.f32 %v1047_v29  ;;  %v1909_v30 = vpop.f32.mrb[2].mxu1 }
 0x183   : > { %v1048_v31 = vmul.f32 -1.442695, %v1909_v30  ;;  %v1912_v32 = vpop.f32.mrb[3].mxu1 }
 0x184   : > { %v1049_v33 = vmul.f32 -1.442695, %v1912_v32  ;;  %v1920_v37 = vpop.f32.mrb[0].mxu0 }
 0x185   : > { %1341 = vpow2.f32 %v1048_v31  ;;  %v1923_v39 = vpop.f32.mrb[1].mxu0 }
 0x186   : > { %1343 = vpow2.f32 %v1049_v33  ;;  %v1915_v34 = vpop.f32.mrb[4].mxu1 }
 0x187   : > { %v1050_v35 = vmul.f32 -1.442695, %v1915_v34  ;;  %v1918_v36 = vpop.f32.mrb[5].mxu1 }
 0x188   : > { %v1051_v38 = vmul.f32 -1.442695, %v1918_v36  ;;  %v1930_v44 = vpop.f32.mrb[2].mxu0 }
 0x189   : > { %1345 = vpow2.f32 %v1050_v35  ;;  %v1933_v48 = vpop.f32.mrb[3].mxu0 }
 0x18a   : > { %1347 = vpow2.f32 %v1051_v38  ;;  %v1925_v40 = vpop.f32.mrb[6].mxu1 }
 0x18b   : > { %v1338_v41 = vpop.eup %1337  ;;  %v1052_v42 = vmul.f32 -1.442695, %v1925_v40  ;;  %v1928_v43 = vpop.f32.mrb[7].mxu1 }
 0x18c   : > { %v1340_v45 = vpop.eup %1339  ;;  %v659_v46 = vadd.f32 1.0, %v1338_v41  ;;  %v1053_v47 = vmul.f32 -1.442695, %v1928_v43  ;;  %v1940_v0 = vpop.f32.mrb[4].mxu0 }
 0x18d   : > { %v660_v49 = vadd.f32 1.0, %v1340_v45  ;;  %1349 = vpow2.f32 %v1052_v42  ;;  %v1943_v57 = vpop.f32.mrb[5].mxu0 }
 0x18e   : > { %1351 = vrcp.f32 %v659_v46  ;;  %v1935_v50 = vpop.f32.mrb[8].mxu1 }
 0x18f   : > { %v1342_v51 = vpop.eup %1341  ;;  %1353 = vrcp.f32 %v660_v49  ;;  %v1054_v52 = vmul.f32 -1.442695, %v1935_v50  ;;  %v1938_v53 = vpop.f32.mrb[9].mxu1 }
 0x190   : > { %v1344_v54 = vpop.eup %1343  ;;  %v661_v55 = vadd.f32 1.0, %v1342_v51  ;;  %1355 = vpow2.f32 %v1053_v47  ;;  %v1055_v56 = vmul.f32 -1.442695, %v1938_v53  ;;  %v1950_v63 = vpop.f32.mrb[6].mxu0 }
 0x191   : > { %v662_v58 = vadd.f32 1.0, %v1344_v54  ;;  %1357 = vpow2.f32 %v1054_v52  ;;  %v1953_v4 = vpop.f32.mrb[7].mxu0 }
 0x192   : > { %1359 = vrcp.f32 %v661_v55  ;;  %v1945_v59 = vpop.f32.mrb[10].mxu1 }
 0x193   : > { %v1346_v60 = vpop.eup %1345  ;;  %1361 = vrcp.f32 %v662_v58  ;;  %v1056_v61 = vmul.f32 -1.442695, %v1945_v59  ;;  %v1948_v62 = vpop.f32.mrb[11].mxu1 }
 0x194   : > { %v1348_v1 = vpop.eup %1347  ;;  %v663_v2 = vadd.f32 1.0, %v1346_v60  ;;  %1363 = vpow2.f32 %v1055_v56  ;;  %v1057_v3 = vmul.f32 -1.442695, %v1948_v62  ;;  %v1960_v10 = vpop.f32.mrb[8].mxu0 }
 0x195   : > { %v664_v5 = vadd.f32 1.0, %v1348_v1  ;;  %1365 = vpow2.f32 %v1056_v61  ;;  %v1963_v14 = vpop.f32.mrb[9].mxu0 }
 0x196   : > { %1367 = vrcp.f32 %v663_v2  ;;  %v1955_v6 = vpop.f32.mrb[12].mxu1 }
 0x197   : > { %v1350_v7 = vpop.eup %1349  ;;  %1369 = vrcp.f32 %v664_v5  ;;  %v1058_v8 = vmul.f32 -1.442695, %v1955_v6  ;;  %v1958_v9 = vpop.f32.mrb[13].mxu1 }
 0x198   : > { %v1352_v11 = vpop.eup %1351  ;;  %v665_v12 = vadd.f32 1.0, %v1350_v7  ;;  %1371 = vpow2.f32 %v1057_v3  ;;  %v1059_v13 = vmul.f32 -1.442695, %v1958_v9  ;;  %v1973_v25 = vpop.f32.mrb[10].mxu0 }
 0x199   : > { %v1354_v15 = vpop.eup %1353  ;;  %v707_v16 = vmul.f32 %v1352_v11, %v1903_v26  ;;  %1373 = vpow2.f32 %v1058_v8  ;;  %v1977_v31 = vpop.f32.mrb[11].mxu0 }
 0x19a   : > { %v1356_v17 = vpop.eup %1355  ;;  %v708_v18 = vmul.f32 %v1354_v15, %v1906_v28  ;;  %1375 = vrcp.f32 %v665_v12  ;;  %v1967_v19 = vpop.f32.mrb[14].mxu1 }
 0x19b   : > { %v1358_v20 = vpop.eup %1357  ;;  %v666_v21 = vadd.f32 1.0, %v1356_v17  ;;  %1377 = vpow2.f32 %v1059_v13  ;;  %v723_v22 = vmul.f32 %v707_v16, %v1920_v37  ;;  %v1060_v23 = vmul.f32 -1.442695, %v1967_v19  ;;  %v1971_v24 = vpop.f32.mrb[15].mxu1 }
 0x19c   : > { %v1360_v27 = vpop.eup %1359  ;;  %v667_v26 = vadd.f32 1.0, %v1358_v20  ;;  %v724_v29 = vmul.f32 %v708_v18, %v1923_v39  ;;  %v1061_v28 = vmul.f32 -1.442695, %v1971_v24  ;;  %v455_v39 = vpop.f32.mrb[12].mxu0 }
 0x19d   : > { %v1362_v33 = vpop.eup %1361  ;;  %v709_v35 = vmul.f32 %v1360_v27, %v1909_v30  ;;  %1379 = vrcp.f32 %v666_v21  ;;  %v457_v51 = vpop.f32.mrb[13].mxu0 }
 0x19e   : > { %v1364_v38 = vpop.eup %1363  ;;  %v710_v37 = vmul.f32 %v1362_v33, %v1912_v32  ;;  %1381 = vrcp.f32 %v667_v26  ;;  %843 = vmatprep.mubr.f32.mxu0 %v724_v29 }
 0x19f   : > { %v1366_v41 = vpop.eup %1365  ;;  %v668_v42 = vadd.f32 1.0, %v1364_v38  ;;  %1383 = vpow2.f32 %v1060_v23  ;;  %v725_v45 = vmul.f32 %v709_v35, %v1930_v44  ;;  %844 = vmatmul.mubr.f32.vlgmr.msra.gmra.mrb[16].mxu0 %v723_v22 }
 0x1a0   : > { %v1368_v46 = vpop.eup %1367  ;;  %v669_v47 = vadd.f32 1.0, %v1366_v41  ;;  %1385 = vpow2.f32 %v1061_v28  ;;  %v726_v49 = vmul.f32 %v710_v37, %v1933_v48  ;;  %v461_v58 = vpop.f32.mrb[14].mxu0 }
 0x1a1   : > { %v1370_v30 = vpop.eup %1369  ;;  %v711_v52 = vmul.f32 %v1368_v46, %v1915_v34  ;;  %1387 = vrcp.f32 %v668_v42  ;;  %v463_v1 = vpop.f32.mrb[15].mxu0 }
 0x1a2   : > { %v1372_v32 = vpop.eup %1371  ;;  %v712_v54 = vmul.f32 %v1370_v30, %v1918_v36  ;;  %1389 = vrcp.f32 %v669_v47  ;;  %848 = vmatprep.mubr.f32.mxu0 %v726_v49 }
 0x1a3   : > { %v1374_v55 = vpop.eup %1373  ;;  %v670_v56 = vadd.f32 1.0, %v1372_v32  ;;  %v727_v44 = vmul.f32 %v711_v52, %v1940_v0  ;;  %849 = vmatmul.mubr.f32.gmra.mrb[18].mxu0 %v725_v45 }
 0x1a4   : > { %v1376_v60 = vpop.eup %1375  ;;  %v671_v61 = vadd.f32 1.0, %v1374_v55  ;;  %v728_v48 = vmul.f32 %v712_v54, %v1943_v57 }
 0x1a5   : > { %v1378_v2 = vpop.eup %1377  ;;  %v713_v34 = vmul.f32 %v1376_v60, %v1925_v40  ;;  %1391 = vrcp.f32 %v670_v56 }
 0x1a6   : > { %1393 = vrcp.f32 %v671_v61  ;;  %v672_v3 = vadd.f32 1.0, %v1378_v2  ;;  %853 = vmatprep.mubr.f32.mxu0 %v728_v48 }
 0x1a7   : > { %v1380_v36 = vpop.eup %1379  ;;  %v729_v5 = vmul.f32 %v713_v34, %v1950_v63  ;;  %854 = vmatmul.mubr.f32.gmra.mrb[20].mxu0 %v727_v44 }
 0x1a8   : > { %v1382_v7 = vpop.eup %1381  ;;  %v714_v0 = vmul.f32 %v1380_v36, %v1928_v43  ;;  %1395 = vrcp.f32 %v672_v3 }
 0x1a9   : > { %v1384_v8 = vpop.eup %1383  ;;  %v715_v11 = vmul.f32 %v1382_v7, %v1935_v50 }
 0x1aa   : > { %v1386_v57 = vpop.eup %1385  ;;  %v673_v12 = vadd.f32 1.0, %v1384_v8  ;;  %v730_v13 = vmul.f32 %v714_v0, %v1953_v4 }
 0x1ab   : > { %v1388_v40 = vpop.eup %1387  ;;  %v674_v15 = vadd.f32 1.0, %v1386_v57  ;;  %v731_v16 = vmul.f32 %v715_v11, %v1960_v10 }
 0x1ac   : > { %v1390_v17 = vpop.eup %1389  ;;  %v716_v18 = vmul.f32 %v1388_v40, %v1938_v53  ;;  %1397 = vrcp.f32 %v673_v12  ;;  %858 = vmatprep.mubr.f32.mxu0 %v730_v13 }
 0x1ad   : > { %v717_v63 = vmul.f32 %v1390_v17, %v1945_v59  ;;  %1399 = vrcp.f32 %v674_v15  ;;  %859 = vmatmul.mubr.f32.gmra.mrb[22].mxu0 %v729_v5 }
 0x1ae   : > { %v732_v43 = vmul.f32 %v716_v18, %v1963_v14 }
 0x1af   : > { %v1392_v50 = vpop.eup %1391  ;;  %v733_v20 = vmul.f32 %v717_v63, %v1973_v25 }
 0x1b0   : > { %v1394_v21 = vpop.eup %1393  ;;  %v718_v4 = vmul.f32 %v1392_v50, %v1948_v62  ;;  %863 = vmatprep.mubr.f32.mxu1 %v732_v43 }
 0x1b1   : > { %v719_v10 = vmul.f32 %v1394_v21, %v1955_v6  ;;  %864 = vmatmul.mubr.f32.vlgmr.msra.gmra.mrb[16].mxu1 %v731_v16 }
 0x1b2   : > { %v1396_v22 = vpop.eup %1395  ;;  %v734_v53 = vmul.f32 %v718_v4, %v1977_v31 }
 0x1b3   : > { %v720_v23 = vmul.f32 %v1396_v22, %v1958_v9  ;;  %v735_v59 = vmul.f32 %v719_v10, %v455_v39 }
 0x1b4   : > { %868 = vmatprep.mubr.f32.mxu1 %v734_v53 }
 0x1b5   : > { %v736_v27 = vmul.f32 %v720_v23, %v457_v51  ;;  %869 = vmatmul.mubr.f32.gmra.mrb[18].mxu1 %v733_v20 }
 0x1b6   : > { %v1398_v14 = vpop.eup %1397 }
 0x1b7   : > { %v1400_v26 = vpop.eup %1399  ;;  %v721_v25 = vmul.f32 %v1398_v14, %v1967_v19  ;;  %873 = vmatprep.mubr.f32.mxu1 %v736_v27 }
 0x1b8   : > { %v722_v62 = vmul.f32 %v1400_v26, %v1971_v24 }
 0x1b9   : > { %v737_v29 = vmul.f32 %v721_v25, %v461_v58  ;;  %874 = vmatmul.mubr.f32.gmra.mrb[20].mxu1 %v735_v59 }
 0x1ba   : > { %v738_v6 = vmul.f32 %v722_v62, %v463_v1 }
 0x1bc   : > { %878 = vmatprep.mubr.f32.mxu1 %v738_v6 }
 0x1bd   : > { %879 = vmatmul.mubr.f32.gmra.mrb[22].mxu1 %v737_v29 }
 0x272   : > { %v1101_v28 = vpop.f32.mrb[16].mxu0 }
 0x273   : > { %v1102_v31 = vpop.f32.mrb[17].mxu0 }
 0x274   : > { %v1103_v9 = vadd.f32 %v1102_v31, %v1101_v28 }
 0x276   : > { %v1104_v33 = vpop.f32.mrb[18].mxu0  ;;  %892 = vst [vmem:[%s2005_s23] sm:$0xff] %v1103_v9 }
 0x277   : > { %v1105_v35 = vpop.f32.mrb[19].mxu0 }
 0x278   : > { %v1106_v19 = vadd.f32 %v1105_v35, %v1104_v33 }
 0x27a   : > { %v1107_v24 = vpop.f32.mrb[20].mxu0  ;;  %893 = vst [vmem:[%s2005_s23 + $0x8] sm:$0xff] %v1106_v19 }
 0x27b   : > { %v1108_v38 = vpop.f32.mrb[21].mxu0 }
 0x27c   : > { %v1109_v37 = vadd.f32 %v1108_v38, %v1107_v24 }
 0x27e   : > { %894 = vst [vmem:[%s2005_s23 + $0x10] sm:$0xff] %v1109_v37 }
 0x280   : > { %v1110_v41 = vpop.f32.mrb[22].mxu0 }
 0x281   : > { %v1111_v42 = vpop.f32.mrb[23].mxu0 }
 0x282   : > { %v1112_v45 = vadd.f32 %v1111_v42, %v1110_v41 }
 0x284   : > { %v1113_v39 = vpop.f32.mrb[16].mxu1  ;;  %895 = vst [vmem:[%s2005_s23 + $0x18] sm:$0xff] %v1112_v45 }
 0x285   : > { %v1114_v46 = vpop.f32.mrb[17].mxu1 }
 0x286   : > { %v1115_v47 = vadd.f32 %v1114_v46, %v1113_v39 }
 0x288   : > { %v1116_v49 = vpop.f32.mrb[18].mxu1  ;;  %896 = vst [vmem:[%s2005_s23 + $0x20] sm:$0xff] %v1115_v47 }
 0x289   : > { %v1117_v51 = vpop.f32.mrb[19].mxu1 }
 0x28a   : > { %v1118_v30 = vadd.f32 %v1117_v51, %v1116_v49 }
 0x28c   : > { %v1119_v52 = vpop.f32.mrb[20].mxu1  ;;  %897 = vst [vmem:[%s2005_s23 + $0x28] sm:$0xff] %v1118_v30 }
 0x28d   : > { %v1120_v32 = vpop.f32.mrb[21].mxu1 }
 0x28e   : > { %v1121_v54 = vadd.f32 %v1120_v32, %v1119_v52 }
 0x290   : > { %v1122_v55 = vpop.f32.mrb[22].mxu1  ;;  %898 = vst [vmem:[%s2005_s23 + $0x30] sm:$0xff] %v1121_v54 }
 0x291   : > { %v1123_v56 = vpop.f32.mrb[23].mxu1 }
 0x292   : > { %v1124_v44 = vadd.f32 %v1123_v56, %v1122_v55 }
 0x294   : > { %899 = vst [vmem:[%s2005_s23 + $0x38] sm:$0xff] %v1124_v44 }
 0x295   : > { %1528 = shalt.err (!%p1525_p0)
}
 0x296   : > { %s1529_s28 = scalar_lea.hbm %s2019_s24, 1024  ;;  %s1533_s12 = scalar_lea.hbm %s2075_s4, 2048 }
 0x297   : > { %p1530_p4 = scmp.ne.s32.totalorder %s2019_s24, %s1529_s28  ;;  %p1534_p12 = scmp.lt.u32.totalorder %s2019_s24, %s2075_s4 }
 0x298   : > { %p1535_p1 = scmp.lt.u32.totalorder %s1533_s12, %s1529_s28  ;;  %p1537_p13 = scmp.lt.u32.totalorder %s1529_s28, %s2019_s24 }
 0x299   : > { %p1531_p2 = pnand %p1530_p4, %p1798_p10 }
 0x29a   : > { %p1536_p11 = por %p1535_p1, %p1534_p12 }
 0x29b   : > { %p1532_p8 = pneg %p1531_p2 }
 0x29c   : > { %p1538_p6 = por %p1537_p13, %p1536_p11 }
 0x29e   : > { %p1539_p3 = pnand %p1538_p6, %p1532_p8 }
 0x2a0   : > { %1542 = shalt.err (!%p1539_p3)
}
 0x2a1   : > { %s1617_s23 = smov 128   ;;  %s1618_s25 = smov 8  }
 0x2a2   : > { %1251 = dma.vmem_to_hbm [thread:$0]  (%p1798_p10), %s2021_s27, 1024, %s2019_s24, %s901_s29, %s1617_s23, %s1617_s23, %s1618_s25  }
 0x2a3 PF: > { %s2095_s6 = sld [smem:[#allocation15_spill]]  ;;  %s929_s14 = sand.u32 1, %s1585_s15  }
 0x2a4   : > { %p2097_p7 = scmp.ge.s32.totalorder %s1605_s20, 2  ;;  %s930_s7 = scalar_lea.sflag [#allocation4], %s929_s14 }
 0x2a9   : > { %p2096_p5 = scmp.ne.s32.totalorder %s2095_s6, 0 }
 0x2ab   : > { %p1268_p9 = pnand %p2097_p7, %p2096_p5 }
 0x2ad   : > { %1580 = dma.done.wait (!%p1268_p9), %s930_s7, 1024  }
 0x2ae   : > { %1582 = vsyncadd (!%p1268_p9), %s930_s7, 4294966272  ;;  %s22_s20 = sadd.s32 1, %s1605_s20   ;;  %s2098_s15 = smov %s1589_s16 }
 0x2af   : > { %p19_p0 = scmp.ge.s32.totalorder %s22_s20, 4   ;;  %s2099_s16 = smov %s1593_s17 }
 0x2b0   : > { %s2100_s17 = smov %s1810_s13  ;;  %s2101_s18 = smov %s1601_s19 }
 0x2b1   : > { %s2102_s19 = smov %s2104_s9  ;;  %21 = sbr.rel (!%p19_p0) target bundleno = 8 (0x8), region = 100 }
 0x2b8   :  { %935 = vsyncpa [#allocation3], 1 }
 0x2b9   :  { %937 = vsyncpa [#allocation3 + $0x1], 1 }
 0x2ba   :  { %938 = vsyncpa [#allocation6], 1 }
 0x2bb   :  { %939 = vsyncpa [#allocation9], 1 }
 0x2bc   :  { %940 = vsyncpa [#allocation4], 1 }
 0x2bd   :  { %942 = vsyncpa [#allocation4 + $0x1], 1 }

</bundles_post_ra>
